<compile_context>
chip_gen: v7x
topology: tpu7x:2x2x1
jax: 0.10.0
libtpu: 0.0.40
codegen_flags: <defaults>
</compile_context>

<pallas_src>
import functools

import jax
import jax.numpy as jnp
from jax.experimental import pallas as pl
from jax.experimental.pallas import tpu as pltpu


def _round_up(x, m):
    return ((x + m - 1) // m) * m


def _pool_classify_kernel(h_ref, w_ref, b_ref, out_ref, acc_ref, *, inv_seq_len):
    # h_ref:   (bt, st, H)  bf16 hidden-state tile (streamed over the seq axis)
    # w_ref:   (H, Lpad)    f32 folded weight W_lm @ W_cls^T (resident, constant)
    # b_ref:   (1, Lpad)    f32 classifier bias (padded)
    # out_ref: (bt, Lpad)   f32 class logits for this batch tile
    # acc_ref: (bt, H)      f32 scratch: running sequence sum
    si = pl.program_id(1)

    @pl.when(si == 0)
    def _():
        acc_ref[...] = jnp.zeros_like(acc_ref)

    # Accumulate the sequence sum in f32 (zero-padded seq positions add 0).
    acc_ref[...] += jnp.sum(h_ref[...].astype(jnp.float32), axis=1)

    @pl.when(si == pl.num_programs(1) - 1)
    def _():
        pooled = acc_ref[...] * inv_seq_len      # mean over the REAL seq length
        out_ref[...] = (
            jnp.dot(pooled, w_ref[...], preferred_element_type=jnp.float32)
            + b_ref[...]
        ).astype(out_ref.dtype)


def sentiment_forward(input_ids, attention_mask, labels, params, *,
                      b_tile=64, seq_tile=None,
                      vmem_limit_bytes=48 * 1024 * 1024):
    """input_ids: int32 [B, S]; attention_mask/labels unused (as in reference)."""
    del attention_mask, labels  # reference forward() ignores them

    emb = params["embedding"]         # [vocab, H]  (bf16 streaming dtype)
    w_eff = params["w_eff"]           # [H, L_pad]  f32 folded LM-head @ classifier
    b_cls = params["cls_b_pad"]       # [1, L_pad]  f32
    num_labels = int(params["num_labels"])

    # Glue: embedding lookup (gather) stays in plain JAX.
    hidden = jnp.take(emb, input_ids, axis=0)                      # [B, S, H]
    B, S, H = hidden.shape
    L_pad = w_eff.shape[1]
    hid_bytes = hidden.dtype.itemsize

    # Batch tiling: free (weights are resident), gives a parallel axis for
    # v7x megacore when B is large.
    B_pad = _round_up(B, 8)
    bt = min(B_pad, b_tile)
    B_pad = _round_up(B_pad, bt)

    # Seq tile sized so the double-buffered hidden block + side buffers fit
    # the VMEM budget (works at real LLaMA H on v7x's 64 MiB as well).
    if seq_tile is None:
        side_bytes = (2 * w_eff.size * w_eff.dtype.itemsize
                      + 2 * b_cls.size * b_cls.dtype.itemsize
                      + 2 * bt * L_pad * 4
                      + bt * H * 4)
        hid_budget = max(vmem_limit_bytes - side_bytes, 0)
        st = hid_budget // (2 * bt * H * hid_bytes)
        st = max(8, (int(st) // 8) * 8)
    else:
        st = max(8, _round_up(seq_tile, 8))
    st = min(st, _round_up(S, 8))
    S_pad = _round_up(S, st)

    # Zero-pad: padded seq rows contribute 0 to the sum (mean stays exact),
    # padded batch rows are sliced off below.
    hidden_p = jnp.pad(hidden, ((0, B_pad - B), (0, S_pad - S), (0, 0)))

    grid = (B_pad // bt, S_pad // st)
    kernel = functools.partial(_pool_classify_kernel, inv_seq_len=1.0 / S)

    out = pl.pallas_call(
        kernel,
        out_shape=jax.ShapeDtypeStruct((B_pad, L_pad), jnp.float32),
        grid_spec=pltpu.PrefetchScalarGridSpec(
            num_scalar_prefetch=0,
            grid=grid,
            in_specs=[
                # Hidden: streamed tile by tile along the seq reduction axis.
                pl.BlockSpec((bt, st, H), lambda bi, si: (bi, si, 0)),
                # Folded weight + bias: constant block index -> DMA'd once.
                pl.BlockSpec((H, L_pad), lambda bi, si: (0, 0)),
                pl.BlockSpec((1, L_pad), lambda bi, si: (0, 0)),
            ],
            out_specs=pl.BlockSpec((bt, L_pad), lambda bi, si: (bi, 0)),
            scratch_shapes=[
                pltpu.VMEM((bt, H), jnp.float32),   # f32 pooling accumulator
            ],
        ),
        compiler_params=pltpu.CompilerParams(
            dimension_semantics=("parallel", "arbitrary"),
            vmem_limit_bytes=vmem_limit_bytes,
        ),
    )(hidden_p, w_eff, b_cls)

    return out[:B, :num_labels]


def init_params(key, vocab_size, hidden, num_labels, hidden_dtype=jnp.bfloat16):
    k1, k2, k3, k4 = jax.random.split(key, 4)
    embedding = jax.random.normal(k1, (vocab_size, hidden), jnp.float32) * 0.02
    lm_head = jax.random.normal(k2, (hidden, vocab_size), jnp.float32) * 0.02
    # nn.Linear(vocab_size, num_labels): weight [L, V], bias [L].
    cls_w = jax.random.normal(k3, (num_labels, vocab_size), jnp.float32) * 0.02
    cls_b = jax.random.normal(k4, (num_labels,), jnp.float32) * 0.02

    # Offline fold (exact, weights are static at inference):
    #   mean_S(h @ W_lm) @ W_cls^T == mean_S(h) @ (W_lm @ W_cls^T)
    # W_eff is tiny ([H, L_pad], ~2 MiB at LLaMA scale), kept in f32 so the
    # only bf16 rounding on the hot path is the streamed hidden states.
    w_eff = lm_head @ cls_w.T                                   # [H, L] f32
    L_pad = _round_up(num_labels, 128)
    w_eff_pad = jnp.pad(w_eff, ((0, 0), (0, L_pad - num_labels)))
    b_pad = jnp.pad(cls_b, (0, L_pad - num_labels)).reshape(1, L_pad)

    return {
        "embedding": embedding.astype(hidden_dtype),
        "lm_head": lm_head,                       # kept for reference check only
        "cls_w_t": cls_w.T,                       # kept for reference check only
        "cls_b": cls_b.reshape(1, num_labels),
        "w_eff": w_eff_pad.astype(jnp.float32),
        "cls_b_pad": b_pad.astype(jnp.float32),
        "num_labels": num_labels,
    }


if __name__ == "__main__":
    # Small shapes consistent with the module's forward:
    B, S, H, V, L = 2, 8, 32, 128, 4   # batch, seq, hidden, vocab, num_labels

    key = jax.random.PRNGKey(0)
    k_ids, k_params = jax.random.split(key)

    input_ids = jax.random.randint(k_ids, (B, S), 0, V, dtype=jnp.int32)
    attention_mask = jnp.ones((B, S), dtype=jnp.int32)
    labels = jnp.zeros((B,), dtype=jnp.int32)

    params = init_params(k_params, V, H, L)

    fwd = jax.jit(functools.partial(sentiment_forward, params=params))
    logits = fwd(input_ids, attention_mask, labels)
    jax.block_until_ready(logits)

    # Reference in plain JAX: same math and ORDER as the PyTorch module
    # (vocab logits -> mean over seq -> classifier), using the same
    # bf16-rounded hidden states the kernel sees.
    hidden = jnp.take(params["embedding"], input_ids, axis=0).astype(jnp.float32)
    lm_logits = jnp.einsum("bsh,hv->bsv", hidden, params["lm_head"])
    pooled = jnp.mean(lm_logits, axis=1)
    ref = pooled @ params["cls_w_t"] + params["cls_b"]

    assert logits.shape == (B, L)
    # Fold + pool-before-matmul is exact up to f32 reassociation.
    assert jnp.allclose(logits, ref, atol=1e-4, rtol=1e-4), (
        jnp.max(jnp.abs(logits - ref)))

    print("KERNEL_OK")
</pallas_src>

<mosaic_0001>
module attributes {stable_mosaic.version = 11 : i64} {
  func.func @_pool_classify_kernel(%arg0: i32, %arg1: i32, %arg2: memref<8x8x32xbf16, #tpu.memory_space<vmem>>, %arg3: memref<32x128xf32, #tpu.memory_space<vmem>>, %arg4: memref<1x128xf32, #tpu.memory_space<vmem>>, %arg5: memref<8x128xf32, #tpu.memory_space<vmem>>, %arg6: memref<8x32xf32, #tpu.memory_space<vmem>>) attributes {dimension_semantics = [#tpu.dimension_semantics<parallel>, #tpu.dimension_semantics<arbitrary>], iteration_bounds = array<i64: 1, 1>, scalar_prefetch = 0 : i64, scratch_operands = 1 : i64, tpu.core_type = #tpu.core_type<tc>, window_params = [{transform_indices = @transform_0, window_bounds = array<i64: 8, 8, 32>}, {pipeline_mode = #tpu.pipeline_mode<synchronous>, transform_indices = @transform_1, window_bounds = array<i64: 32, 128>}, {pipeline_mode = #tpu.pipeline_mode<synchronous>, transform_indices = @transform_2, window_bounds = array<i64: 1, 128>}, {transform_indices = @transform_3, window_bounds = array<i64: 8, 128>}]} {
    %c0_i32 = arith.constant 0 : i32
    %0 = arith.cmpi eq, %arg1, %c0_i32 : i32
    %1 = arith.extui %0 : i1 to i32
    %c0_i32_0 = arith.constant 0 : i32
    %2 = arith.cmpi ne, %1, %c0_i32_0 : i32
    scf.if %2 {
      %cst_9 = arith.constant 0.000000e+00 : f32
      %12 = vector.broadcast %cst_9 : f32 to vector<8x32xf32>
      %c0_10 = arith.constant 0 : index
      %c0_11 = arith.constant 0 : index
      %13 = vector.load %arg6[%c0_10, %c0_11] : memref<8x32xf32, #tpu.memory_space<vmem>>, vector<8x32xf32>
      tpu.vector_store %arg6[%c0_10, %c0_11], %12 {strides = array<i32>} : memref<8x32xf32, #tpu.memory_space<vmem>>, vector<8x32xf32>,
    } else {
    }
    %c0 = arith.constant 0 : index
    %c0_1 = arith.constant 0 : index
    %3 = vector.load %arg6[%c0, %c0_1] : memref<8x32xf32, #tpu.memory_space<vmem>>, vector<8x32xf32>
    %c0_2 = arith.constant 0 : index
    %c0_3 = arith.constant 0 : index
    %c0_4 = arith.constant 0 : index
    %4 = vector.load %arg2[%c0_2, %c0_3, %c0_4] : memref<8x8x32xbf16, #tpu.memory_space<vmem>>, vector<8x8x32xbf16>
    %5 = arith.extf %4 : vector<8x8x32xbf16> to vector<8x8x32xf32>
    %cst = arith.constant dense<0.000000e+00> : vector<8x32xf32>
    %6 = vector.multi_reduction <add>, %5, %cst [1] : vector<8x8x32xf32> to vector<8x32xf32>
    %7 = arith.addf %3, %6 : vector<8x32xf32>
    %c0_5 = arith.constant 0 : index
    %c0_6 = arith.constant 0 : index
    %8 = vector.load %arg6[%c0_5, %c0_6] : memref<8x32xf32, #tpu.memory_space<vmem>>, vector<8x32xf32>
    tpu.vector_store %arg6[%c0_5, %c0_6], %7 {strides = array<i32>} : memref<8x32xf32, #tpu.memory_space<vmem>>, vector<8x32xf32>,
    %c0_i32_7 = arith.constant 0 : i32
    %9 = arith.cmpi eq, %arg1, %c0_i32_7 : i32
    %10 = arith.extui %9 : i1 to i32
    %c0_i32_8 = arith.constant 0 : i32
    %11 = arith.cmpi ne, %10, %c0_i32_8 : i32
    scf.if %11 {
      %c0_9 = arith.constant 0 : index
      %c0_10 = arith.constant 0 : index
      %12 = vector.load %arg6[%c0_9, %c0_10] : memref<8x32xf32, #tpu.memory_space<vmem>>, vector<8x32xf32>
      %cst_11 = arith.constant 1.250000e-01 : f32
      %13 = vector.broadcast %cst_11 : f32 to vector<8x32xf32>
      %14 = arith.mulf %12, %13 : vector<8x32xf32>
      %c0_12 = arith.constant 0 : index
      %c0_13 = arith.constant 0 : index
      %15 = vector.load %arg3[%c0_12, %c0_13] : memref<32x128xf32, #tpu.memory_space<vmem>>, vector<32x128xf32>
      %cst_14 = arith.constant dense<0.000000e+00> : vector<8x128xf32>
      %16 = tpu.matmul %14, %15, %cst_14 {dimension_numbers = #tpu.dot_dimension_numbers<[1], [0], [0], [1], [0, 0, 1, 1], [], []>} : vector<8x32xf32>, vector<32x128xf32>, vector<8x128xf32> -> vector<8x128xf32>
      %c0_15 = arith.constant 0 : index
      %c0_16 = arith.constant 0 : index
      %17 = vector.load %arg4[%c0_15, %c0_16] : memref<1x128xf32, #tpu.memory_space<vmem>>, vector<1x128xf32>
      %18 = vector.broadcast %17 : vector<1x128xf32> to vector<8x128xf32>
      %19 = arith.addf %16, %18 : vector<8x128xf32>
      %c0_17 = arith.constant 0 : index
      %c0_18 = arith.constant 0 : index
      %20 = vector.load %arg5[%c0_17, %c0_18] : memref<8x128xf32, #tpu.memory_space<vmem>>, vector<8x128xf32>
      tpu.vector_store %arg5[%c0_17, %c0_18], %19 {strides = array<i32>} : memref<8x128xf32, #tpu.memory_space<vmem>>, vector<8x128xf32>,
    } else {
    }
    return
  }
  func.func @transform_0(%arg0: i32, %arg1: i32) -> (i32, i32, i32) {
    %c0_i32 = arith.constant 0 : i32
    %c0_i32_0 = arith.constant 0 : i32
    return %arg0, %arg1, %c0_i32 : i32, i32, i32
  }
  func.func @transform_1(%arg0: i32, %arg1: i32) -> (i32, i32) {
    %c0_i32 = arith.constant 0 : i32
    %c0_i32_0 = arith.constant 0 : i32
    %c0_i32_1 = arith.constant 0 : i32
    return %c0_i32, %c0_i32_0 : i32, i32
  }
  func.func @transform_2(%arg0: i32, %arg1: i32) -> (i32, i32) {
    %c0_i32 = arith.constant 0 : i32
    %c0_i32_0 = arith.constant 0 : i32
    %c0_i32_1 = arith.constant 0 : i32
    return %c0_i32, %c0_i32_0 : i32, i32
  }
  func.func @transform_3(%arg0: i32, %arg1: i32) -> (i32, i32) {
    %c0_i32 = arith.constant 0 : i32
    %c0_i32_0 = arith.constant 0 : i32
    return %arg0, %c0_i32 : i32, i32
  }
}

</mosaic_0001>

<bundles_post_ra>
// kernel: sentiment_forward.1
= control target key start
LH: loop header
LB: loop body
LE: loop exit
PB: predicated region body
PF: predicated region fallthrough
CT: control target
= control target key end

     0   :  { %vm18_vm0 = vcmask 261120   ;;  %v259_v0 = vmov 0.0|0.0   ;;  %v260_v4 = vmov 0.0   ;;  %vm102_vm1 = vcmask 1041409   ;;  %s329_s1 = inlined_call_operand.vmem [shape: f32[32,128], index: 1, kind: input, shape index: {}]   ;;  %s330_s0 = inlined_call_operand.vmem [shape: bf16[8,8,32], index: 0, kind: input, shape index: {}]   ;;  %s331_s2 = inlined_call_operand.vmem [shape: f32[1,128], index: 2, kind: input, shape index: {}]   ;;  %s332_s3 = inlined_call_operand.vmem [shape: f32[8,128], index: 3, kind: output, shape index: {}]  }
   0x1   :  { %250 = vmatprep.subr.bf16.mxu0 %v259_v0  ;;  %v124_v1 = vld [vmem:[%s329_s1] sm:$0xff]  ;;  %v125_v2 = vld [vmem:[%s329_s1 + $0x8] sm:$0xff]  ;;  %v126_v3 = vld [vmem:[%s329_s1 + $0x10] sm:$0xff]  ;;  %19 = vst.msk [vmem:[#allocation2] sm:$0xff] %vm18_vm0, %v260_v4  ;;  %vm104_vm2 = vcmask 1042434   ;;  %vm106_vm3 = vcmask 1043459  }
   0x2   :  { %v251_v5 = vpack.c.bf16 %v125_v2, %v124_v1  ;;  %v127_v6 = vld [vmem:[%s329_s1 + $0x18] sm:$0xff]  ;;  %v216_v7 = vld [vmem:[%s330_s0] sm:$0xff]   ;;  %v231_v8 = vld [vmem:[%s330_s0 + $0x8] sm:$0xff]   ;;  %vm108_vm4 = vcmask 1044484   ;;  %vm110_vm5 = vcmask 1045509   ;;  %vm261_vm6 = vmmov 0  }
   0x3   :  { %v254_v9 = vpack.c.bf16 %v127_v6, %v126_v3  ;;  %v217_v10 = vunpack.c.l.bf16 %v216_v7  ;;  %v218_v11 = vunpack.c.h.bf16 %v216_v7  ;;  %v221_v12 = vunpack.c.l.bf16 %v231_v8  ;;  %v232_v13 = vld [vmem:[%s330_s0 + $0x10] sm:$0xff]   ;;  %v233_v14 = vld [vmem:[%s330_s0 + $0x18] sm:$0xff]   ;;  %247 = vmatprep.mubr.msk.f32.mxu0 %vm261_vm6, %v260_v4  ;;  %v213_v4 = vld [vmem:[%s331_s2] ss:$0 sm:$0xff] }
   0x4   :  { %252 = vmatpush3.bf16.msra.mxu0 %v251_v5  ;;  %v222_v15 = vunpack.c.h.bf16 %v231_v8  ;;  %v225_v16 = vunpack.c.l.bf16 %v232_v13  ;;  %v226_v17 = vunpack.c.h.bf16 %v232_v13  ;;  %v229_v18 = vunpack.c.l.bf16 %v233_v14 }
   0x5   :  { %253 = vmatprep.subr.bf16.mxu0 %v259_v0  ;;  %v230_v19 = vunpack.c.h.bf16 %v233_v14  ;;  %v38_v20 = vsel %vm18_vm0, %v217_v10, 0.0  ;;  %v45_v21 = vsel %vm18_vm0, %v218_v11, 0.0  ;;  %v52_v22 = vsel %vm18_vm0, %v221_v12, 0.0 }
   0x6   :  { %v39_v23 = vrot.slane %v38_v20, 4  ;;  %v46_v24 = vrot.slane %v45_v21, 4  ;;  %v53_v25 = vrot.slane %v52_v22, 4  ;;  %v59_v26 = vsel %vm18_vm0, %v222_v15, 0.0 }
   0x7   :  { %v60_v27 = vrot.slane %v59_v26, 4  ;;  %v66_v28 = vsel %vm18_vm0, %v225_v16, 0.0  ;;  %v73_v29 = vsel %vm18_vm0, %v226_v17, 0.0  ;;  %v80_v30 = vsel %vm18_vm0, %v229_v18, 0.0 }
   0x8   :  { %255 = vmatpush3.bf16.msra.mxu0 %v254_v9  ;;  %v40_v31 = vadd.f32 %v39_v23, %v38_v20  ;;  %v47_v32 = vadd.f32 %v46_v24, %v45_v21  ;;  %v54_v33 = vadd.f32 %v53_v25, %v52_v22  ;;  %v67_v34 = vrot.slane %v66_v28, 4  ;;  %v20_v17 = vld [vmem:[#allocation2] sm:$0xff] }
   0x9   :  { %v61_v35 = vadd.f32 %v60_v27, %v59_v26  ;;  %v74_v36 = vrot.slane %v73_v29, 4  ;;  %v81_v37 = vrot.slane %v80_v30, 4  ;;  %v87_v38 = vsel %vm18_vm0, %v230_v19, 0.0 }
   0xa   :  { %v41_v39 = vrot.slane %v40_v31, 2  ;;  %v48_v40 = vrot.slane %v47_v32, 2  ;;  %v55_v41 = vrot.slane %v54_v33, 2  ;;  %v68_v42 = vadd.f32 %v67_v34, %v66_v28 }
   0xb   :  { %v62_v43 = vrot.slane %v61_v35, 2  ;;  %v75_v44 = vadd.f32 %v74_v36, %v73_v29  ;;  %v82_v45 = vadd.f32 %v81_v37, %v80_v30  ;;  %v88_v46 = vrot.slane %v87_v38, 4 }
   0xc   :  { %v42_v47 = vadd.f32 %v41_v39, %v40_v31  ;;  %v49_v48 = vadd.f32 %v48_v40, %v47_v32  ;;  %v56_v49 = vadd.f32 %v55_v41, %v54_v33  ;;  %v69_v50 = vrot.slane %v68_v42, 2 }
   0xd   :  { %v63_v51 = vadd.f32 %v62_v43, %v61_v35  ;;  %v76_v52 = vrot.slane %v75_v44, 2  ;;  %v83_v53 = vrot.slane %v82_v45, 2  ;;  %v89_v54 = vadd.f32 %v88_v46, %v87_v38 }
   0xe   :  { %v43_v55 = vrot.slane %v42_v47, 1  ;;  %v50_v56 = vrot.slane %v49_v48, 1  ;;  %v57_v57 = vrot.slane %v56_v49, 1  ;;  %v70_v58 = vadd.f32 %v69_v50, %v68_v42 }
   0xf   :  { %v64_v59 = vrot.slane %v63_v51, 1  ;;  %v77_v60 = vadd.f32 %v76_v52, %v75_v44  ;;  %v84_v61 = vadd.f32 %v83_v53, %v82_v45  ;;  %v90_v62 = vrot.slane %v89_v54, 2 }
  0x10   :  { %v44_v63 = vadd.f32 %v43_v55, %v42_v47  ;;  %v51_v0 = vadd.f32 %v50_v56, %v49_v48  ;;  %v58_v1 = vadd.f32 %v57_v57, %v56_v49  ;;  %v71_v2 = vrot.slane %v70_v58, 1 }
  0x11   :  { %v65_v3 = vadd.f32 %v64_v59, %v63_v51  ;;  %v78_v5 = vrot.slane %v77_v60, 1  ;;  %v85_v6 = vrot.slane %v84_v61, 1  ;;  %v91_v7 = vadd.f32 %v90_v62, %v89_v54 }
  0x12   :  { %v72_v8 = vadd.f32 %v71_v2, %v70_v58  ;;  %v103_v9 = vsel %vm102_vm1, %v51_v0, %v44_v63  ;;  %vm112_vm7 = vcmask 1046534   ;;  %vm114_vm8 = vcmask 1047559  }
  0x13   :  { %v79_v10 = vadd.f32 %v78_v5, %v77_v60  ;;  %v86_v11 = vadd.f32 %v85_v6, %v84_v61  ;;  %v92_v12 = vrot.slane %v91_v7, 1  ;;  %v105_v13 = vsel %vm104_vm2, %v58_v1, %v103_v9 }
  0x14   :  { %v107_v14 = vsel %vm106_vm3, %v65_v3, %v105_v13 }
  0x15   :  { %v93_v15 = vadd.f32 %v92_v12, %v91_v7  ;;  %v109_v16 = vsel %vm108_vm4, %v72_v8, %v107_v14 }
  0x16   :  { %v111_v18 = vsel %vm110_vm5, %v79_v10, %v109_v16 }
  0x17   :  { %v113_v19 = vsel %vm112_vm7, %v86_v11, %v111_v18 }
  0x18   :  { %v115_v20 = vsel %vm114_vm8, %v93_v15, %v113_v19 }
  0x19   :  { %v117_v21 = vadd.f32 %v115_v20, %v20_v17 }
  0x1b   :  { %118 = vst.msk [vmem:[#allocation2] sm:$0xff] %vm18_vm0, %v117_v21 }
  0x22   :  { %v122_v22 = vld [vmem:[#allocation2] sm:$0xff] }
  0x23   :  { %v123_v23 = vmul.f32 0.125, %v122_v22 }
  0x25   :  { %248 = vmatmul.mubr.msk.f32.vlgmr.msra.gmra.mrb[0].mxu0 %vm18_vm0, %v123_v23 }
  0xf8   :  { %v204_v24 = vpop.f32.mrb[0].mxu0 }
  0xf9   :  { %v205_v25 = vadd.f32 %v213_v4, %v204_v24  ;;  %v249_v26 = vpop.f32.mrb[1].mxu0 }
  0xfb   :  { %208 = vst [vmem:[%s332_s3] sm:$0xff] %v205_v25 }

</bundles_post_ra>
